<compile_context>
chip_gen: v6e
topology: v6e:2x2x1
jax: 0.10.0
libtpu: 0.0.40
codegen_flags: <defaults>
</compile_context>

<pallas_src>
import functools

import jax
import jax.numpy as jnp
from jax import lax
from jax.experimental import pallas as pl
from jax.experimental.pallas import tpu as pltpu


_LANES = 128
_SUBLANES = 8
_MIN_PALLAS_L = 128                      # below this, use the lax.top_k fallback
_VMEM_LIMIT_BYTES = 48 * 1024 * 1024     # > scoped defaults (16/32 MiB), < v7x 64 MiB physical
_BLOCK_BUDGET_BYTES = 20 * 1024 * 1024   # double-buffered blocks + temps per grid step
_PREFERRED_ROW_TILE = 512                # sweet spot for mem-bound tiled kernels


def _round_up(x: int, m: int) -> int:
    return ((x + m - 1) // m) * m


def _kmax_kernel(x_ref, o_ref, *, k: int, compute_dtype):
    # x_ref: (TR, L) block; o_ref: (TR, KP) block with KP a multiple of 128
    # (lane-dense output -> unmasked full-width stores).
    vals = x_ref[...].astype(compute_dtype)
    rows, length = vals.shape
    kp = o_ref.shape[-1]

    # Hoisted iotas (reused every selection pass).
    lane_idx = lax.broadcasted_iota(jnp.int32, (rows, length), 1)
    col_idx = lax.broadcasted_iota(jnp.int32, (rows, kp), 1)

    acc = jnp.zeros((rows, kp), compute_dtype)

    # k is small and static -> unrolled selection loop (sorted descending).
    for j in range(k):
        m = jnp.max(vals, axis=-1, keepdims=True)        # (rows, 1) current max
        acc = jnp.where(col_idx == j, m, acc)            # place column j (no concat)
        if j + 1 < k:
            # Mask ONLY the first occurrence of the max so duplicates are
            # returned multiple times, exactly like torch.topk.
            # (argmax would save two VALU ops here, but variadic-reduce
            #  lowering is not guaranteed in Mosaic, so we keep the proven
            #  compare + min-reduce form.)
            is_max = vals == m
            first = jnp.min(jnp.where(is_max, lane_idx, length),
                            axis=-1, keepdims=True)
            vals = jnp.where(lane_idx == first, -jnp.inf, vals)

    o_ref[...] = acc.astype(o_ref.dtype)


def _pick_row_tile(n_rows: int, L: int, kp: int,
                   in_itemsize: int, out_itemsize: int,
                   compute_itemsize: int) -> int:
    """Largest row tile (multiple of 8) that fits the per-step VMEM budget."""
    # One grid step: double-buffered input + output blocks, plus a rough
    # allowance for in-kernel temporaries (upcast copy, masked copy, iota).
    per_row = (2 * (L * in_itemsize + kp * out_itemsize)
               + 3 * L * compute_itemsize)
    cap = max(_BLOCK_BUDGET_BYTES // per_row, _SUBLANES)
    rt = min(_PREFERRED_ROW_TILE, cap)

    rows8 = _round_up(max(n_rows, 1), _SUBLANES)
    # Keep a handful of grid steps when possible so the software pipeline (and
    # v7x's two TensorCores via the "parallel" axis) stays busy.
    min_steps = 4
    if rows8 >= min_steps * _SUBLANES:
        per_step = max(_SUBLANES,
                       (-(-rows8 // min_steps)) // _SUBLANES * _SUBLANES)
        rt = min(rt, per_step)
    else:
        rt = min(rt, rows8)

    rt = max(_SUBLANES, (rt // _SUBLANES) * _SUBLANES)
    return rt


def _kmax_rows(x2d: jax.Array, k: int) -> jax.Array:
    """x2d: (R, L) -> (R, k) top-k values per row, sorted descending."""
    R, L = x2d.shape

    if jnp.issubdtype(x2d.dtype, jnp.floating):
        compute_dtype = x2d.dtype            # bf16 stays bf16 (v6e/v7x native)
    else:
        # TODO(synk): f32 compute loses exactness for integer |values| > 2^24.
        compute_dtype = jnp.float32

    kp = max(_LANES, _round_up(k, _LANES))   # lane-dense output block
    in_itemsize = jnp.dtype(x2d.dtype).itemsize
    compute_itemsize = jnp.dtype(compute_dtype).itemsize
    rt = _pick_row_tile(R, L, kp, in_itemsize, in_itemsize, compute_itemsize)
    # TODO(synk): for extremely large L, chunk L inside the kernel with a
    # running top-k scratch instead of shrinking the row tile further.

    R_pad = _round_up(R, rt)
    if R_pad != R:
        x2d = jnp.pad(x2d, ((0, R_pad - R), (0, 0)))

    out = pl.pallas_call(
        functools.partial(_kmax_kernel, k=k, compute_dtype=compute_dtype),
        out_shape=jax.ShapeDtypeStruct((R_pad, kp), x2d.dtype),
        grid_spec=pltpu.PrefetchScalarGridSpec(
            num_scalar_prefetch=0,
            grid=(R_pad // rt,),
            in_specs=[pl.BlockSpec((rt, L), lambda i: (i, 0))],
            out_specs=pl.BlockSpec((rt, kp), lambda i: (i, 0)),
        ),
        compiler_params=pltpu.CompilerParams(
            dimension_semantics=("parallel",),
            vmem_limit_bytes=_VMEM_LIMIT_BYTES,
        ),
    )(x2d)
    return out[:R, :k]


def k_max_pooling(x: jax.Array, k: int, axis: int) -> jax.Array:
    """JAX/Pallas equivalent of KMaxPooling(k, axis).forward(x)."""
    ndim = x.ndim
    axis = axis % ndim
    L = x.shape[axis]
    if not (1 <= k <= L):
        raise ValueError(f"k={k} must satisfy 1 <= k <= input.shape[axis]={L}")
    # TODO(synk): rows whose max is NaN diverge slightly from torch.topk (the
    # same NaN may be repeated for all k positions).

    # Move the pooled axis to last, flatten the rest into rows.
    perm = [d for d in range(ndim) if d != axis] + [axis]
    inv_perm = [0] * ndim
    for i, p in enumerate(perm):
        inv_perm[p] = i
    xt = jnp.transpose(x, perm)
    lead_shape = xt.shape[:-1]
    x2d = xt.reshape(-1, L)

    if L < _MIN_PALLAS_L:
        # Tiny pooled axis: most of the 128 lanes would sit idle inside a
        # kernel; plain top_k is cheaper than a Pallas launch here.
        out2d = lax.top_k(x2d, k)[0]
    else:
        out2d = _kmax_rows(x2d, k)

    out = out2d.reshape(*lead_shape, k)
    return jnp.transpose(out, inv_perm)


if __name__ == "__main__":
    # 1) Pallas path: pooled axis wide enough to fill the 128-lane axis.
    B, C, L = 2, 4, 256
    k, axis = 3, 2
    x = jax.random.normal(jax.random.PRNGKey(0), (B, C, L), dtype=jnp.float32)
    out = jax.block_until_ready(k_max_pooling(x, k=k, axis=axis))
    ref = lax.top_k(x, k)[0]
    assert out.shape == (B, C, k), out.shape
    assert out.dtype == x.dtype
    assert jnp.array_equal(out, ref), (out, ref)

    # 2) Pallas path, bf16 input, pooling over a middle axis.
    xb = jax.random.normal(jax.random.PRNGKey(1), (2, 256, 4), dtype=jnp.bfloat16)
    outb = jax.block_until_ready(k_max_pooling(xb, k=5, axis=1))
    refb = jnp.moveaxis(lax.top_k(jnp.moveaxis(xb, 1, -1), 5)[0], -1, 1)
    assert outb.shape == (2, 5, 4) and outb.dtype == xb.dtype
    assert jnp.array_equal(outb, refb), (outb, refb)

    # 3) Small-L fallback path (typical deepctr seq_len).
    xs = jax.random.normal(jax.random.PRNGKey(2), (2, 4, 16), dtype=jnp.float32)
    outs = jax.block_until_ready(k_max_pooling(xs, k=2, axis=2))
    refs = lax.top_k(xs, 2)[0]
    assert outs.shape == (2, 4, 2)
    assert jnp.array_equal(outs, refs), (outs, refs)

    print("KERNEL_OK")
</pallas_src>

<mosaic_0001>
module attributes {stable_mosaic.version = 11 : i64} {
  func.func @_kmax_kernel(%arg0: i32, %arg1: memref<8x256xf32, #tpu.memory_space<vmem>>, %arg2: memref<8x128xf32, #tpu.memory_space<vmem>>) attributes {dimension_semantics = [#tpu.dimension_semantics<parallel>], iteration_bounds = array<i64: 1>, scalar_prefetch = 0 : i64, scratch_operands = 0 : i64, tpu.core_type = #tpu.core_type<tc>, window_params = [{transform_indices = @transform_0, window_bounds = array<i64: 8, 256>}, {transform_indices = @transform_1, window_bounds = array<i64: 8, 128>}]} {
    %c0 = arith.constant 0 : index
    %c0_0 = arith.constant 0 : index
    %0 = vector.load %arg1[%c0, %c0_0] : memref<8x256xf32, #tpu.memory_space<vmem>>, vector<8x256xf32>
    %1 = tpu.iota {dimensions = array<i32: 1>} : vector<8x256xi32>
    %2 = tpu.iota {dimensions = array<i32: 1>} : vector<8x128xi32>
    %cst = arith.constant 0.000000e+00 : f32
    %3 = vector.broadcast %cst : f32 to vector<8x128xf32>
    %cst_1 = arith.constant dense<0xFF800000> : vector<8xf32>
    %4 = vector.multi_reduction <maximumf>, %0, %cst_1 [1] : vector<8x256xf32> to vector<8xf32>
    %5 = vector.shape_cast %4 : vector<8xf32> to vector<8x1xf32>
    %c0_i32 = arith.constant 0 : i32
    %6 = vector.broadcast %c0_i32 : i32 to vector<8x128xi32>
    %7 = arith.cmpi eq, %2, %6 : vector<8x128xi32>
    %8 = vector.shape_cast %5 : vector<8x1xf32> to vector<8x1xf32>
    %9 = vector.broadcast %8 : vector<8x1xf32> to vector<8x128xf32>
    %10 = arith.select %7, %9, %3 : vector<8x128xi1>, vector<8x128xf32>
    %11 = vector.broadcast %5 : vector<8x1xf32> to vector<8x256xf32>
    %12 = arith.cmpf oeq, %0, %11 : vector<8x256xf32>
    %c256_i32 = arith.constant 256 : i32
    %13 = vector.broadcast %c256_i32 : i32 to vector<8x256xi32>
    %14 = arith.select %12, %1, %13 : vector<8x256xi1>, vector<8x256xi32>
    %cst_2 = arith.constant dense<2147483647> : vector<8xi32>
    %15 = vector.multi_reduction <minsi>, %14, %cst_2 [1] : vector<8x256xi32> to vector<8xi32>
    %16 = vector.shape_cast %15 : vector<8xi32> to vector<8x1xi32>
    %17 = vector.broadcast %16 : vector<8x1xi32> to vector<8x256xi32>
    %18 = arith.cmpi eq, %1, %17 : vector<8x256xi32>
    %cst_3 = arith.constant 0xFF800000 : f32
    %19 = vector.broadcast %cst_3 : f32 to vector<8x256xf32>
    %20 = arith.select %18, %19, %0 : vector<8x256xi1>, vector<8x256xf32>
    %cst_4 = arith.constant dense<0xFF800000> : vector<8xf32>
    %21 = vector.multi_reduction <maximumf>, %20, %cst_4 [1] : vector<8x256xf32> to vector<8xf32>
    %22 = vector.shape_cast %21 : vector<8xf32> to vector<8x1xf32>
    %c1_i32 = arith.constant 1 : i32
    %23 = vector.broadcast %c1_i32 : i32 to vector<8x128xi32>
    %24 = arith.cmpi eq, %2, %23 : vector<8x128xi32>
    %25 = vector.shape_cast %22 : vector<8x1xf32> to vector<8x1xf32>
    %26 = vector.broadcast %25 : vector<8x1xf32> to vector<8x128xf32>
    %27 = arith.select %24, %26, %10 : vector<8x128xi1>, vector<8x128xf32>
    %28 = vector.broadcast %22 : vector<8x1xf32> to vector<8x256xf32>
    %29 = arith.cmpf oeq, %20, %28 : vector<8x256xf32>
    %c256_i32_5 = arith.constant 256 : i32
    %30 = vector.broadcast %c256_i32_5 : i32 to vector<8x256xi32>
    %31 = arith.select %29, %1, %30 : vector<8x256xi1>, vector<8x256xi32>
    %cst_6 = arith.constant dense<2147483647> : vector<8xi32>
    %32 = vector.multi_reduction <minsi>, %31, %cst_6 [1] : vector<8x256xi32> to vector<8xi32>
    %33 = vector.shape_cast %32 : vector<8xi32> to vector<8x1xi32>
    %34 = vector.broadcast %33 : vector<8x1xi32> to vector<8x256xi32>
    %35 = arith.cmpi eq, %1, %34 : vector<8x256xi32>
    %cst_7 = arith.constant 0xFF800000 : f32
    %36 = vector.broadcast %cst_7 : f32 to vector<8x256xf32>
    %37 = arith.select %35, %36, %20 : vector<8x256xi1>, vector<8x256xf32>
    %cst_8 = arith.constant dense<0xFF800000> : vector<8xf32>
    %38 = vector.multi_reduction <maximumf>, %37, %cst_8 [1] : vector<8x256xf32> to vector<8xf32>
    %39 = vector.shape_cast %38 : vector<8xf32> to vector<8x1xf32>
    %c2_i32 = arith.constant 2 : i32
    %40 = vector.broadcast %c2_i32 : i32 to vector<8x128xi32>
    %41 = arith.cmpi eq, %2, %40 : vector<8x128xi32>
    %42 = vector.shape_cast %39 : vector<8x1xf32> to vector<8x1xf32>
    %43 = vector.broadcast %42 : vector<8x1xf32> to vector<8x128xf32>
    %44 = arith.select %41, %43, %27 : vector<8x128xi1>, vector<8x128xf32>
    %c0_9 = arith.constant 0 : index
    %c0_10 = arith.constant 0 : index
    %45 = vector.load %arg2[%c0_9, %c0_10] : memref<8x128xf32, #tpu.memory_space<vmem>>, vector<8x128xf32>
    tpu.vector_store %arg2[%c0_9, %c0_10], %44 {strides = array<i32>} : memref<8x128xf32, #tpu.memory_space<vmem>>, vector<8x128xf32>,
    return
  }
  func.func @transform_0(%arg0: i32) -> (i32, i32) {
    %c0_i32 = arith.constant 0 : i32
    %c0_i32_0 = arith.constant 0 : i32
    return %arg0, %c0_i32 : i32, i32
  }
  func.func @transform_1(%arg0: i32) -> (i32, i32) {
    %c0_i32 = arith.constant 0 : i32
    %c0_i32_0 = arith.constant 0 : i32
    return %arg0, %c0_i32 : i32, i32
  }
}

</mosaic_0001>

<bundles_post_ra>
// kernel: tpu_custom_call.1
= control target key start
LH: loop header
LB: loop body
LE: loop exit
PB: predicated region body
PF: predicated region fallthrough
CT: control target
= control target key end

     0   :  { %6 = vsyncpa [#allocation3], 0  ;;  %s179_s0 = inlined_call_operand.hbm [shape: f32[8,256], index: 0, kind: input, shape index: {}]   ;;  %s180_s1 = inlined_call_operand.hbm [shape: f32[8,128], index: 1, kind: output, shape index: {}]  }
   0x1   :  { %7 = vsyncpa [#allocation4], 0  ;;  %s151_s6 = smov [#allocation2]  }
   0x2   :  { %s14_s7 = sshll.u32 %s151_s6, 4  ;;  %s15_s7 = int_to_ptr.vmem [resolvable:$true] %s14_s7 }
   0x3   :  { %s115_s8 = scalar_lea.vmem %s15_s7, 256  ;;  %p120_p1 = scmp.lt.s32.totalorder %s15_s7, %s15_s7 }
   0x4   :  { %p116_p0 = scmp.ne.s32.totalorder %s15_s7, %s115_s8  ;;  %p121_p2 = scmp.lt.s32.totalorder %s115_s8, %s115_s8 }
   0x6   :  { %p122_p3 = por %p121_p2, %p120_p1 }
   0x8   :  { %p123_p4 = pnand %p122_p3, %p116_p0 }
   0xa   :  { %126 = shalt.err (!%p123_p4)
}
   0xb   :  { %17 = dma.hbm_to_vmem [thread:$0]  %s179_s0, 256, %s15_s7, [#allocation3]  }
   0xc   :  { %147 = dma.done.wait [#allocation3], 256  }
   0xd   :  { %148 = vsyncadd [#allocation3], 4294967040  ;;  %v21_v0 = vld [vmem:[#allocation2] sm:$0xff]  ;;  %v22_v1 = vld [vmem:[#allocation2 + $0x8] sm:$0xff]  ;;  %v23_v3 = vlaneseq  ;;  %s152_s0 = smov [#allocation5]  }
   0xe   :  { %v26_v2 = vmax.f32 %v21_v0, %v22_v1  ;;  %s96_s11 = sshll.u32 %s152_s0, 4  ;;  %s97_s11 = int_to_ptr.vmem [resolvable:$true] %s96_s11 }
   0xf   :  { %v166_v4 = vand.u32 127, %v23_v3  ;;  %s127_s12 = scalar_lea.vmem %s97_s11, 128  ;;  %p132_p6 = scmp.lt.s32.totalorder %s97_s11, %s97_s11 }
  0x10   :  { %27 = vmax.xlane.f32.xlu0 %v26_v2  ;;  %p128_p5 = scmp.ne.s32.totalorder %s97_s11, %s127_s12  ;;  %p133_p7 = scmp.lt.s32.totalorder %s127_s12, %s127_s12 }
  0x11   :  { %v25_v5 = vadd.s32 128, %v166_v4  ;;  %vm29_vm12 = vcmp.eq.s32.totalorder %v166_v4, 0  ;;  %vm58_vm13 = vcmp.eq.s32.totalorder %v166_v4, 1  ;;  %vm87_vm14 = vcmp.eq.s32.totalorder %v166_v4, 2 }
  0x12   :  { %p134_p8 = por %p133_p7, %p132_p6 }
  0x14   :  { %p135_p9 = pnand %p134_p8, %p128_p5 }
  0x99   :  { %v28_v6 = vpop.xlane.xlu0 %27 }
  0x9a   :  { %vm31_vm0 = vcmp.eq.f32.partialorder %v21_v0, %v28_v6  ;;  %vm32_vm1 = vcmp.eq.f32.partialorder %v22_v1, %v28_v6  ;;  %v30_v42 = vsel %vm29_vm12, %v28_v6, 0.0 }
  0x9b   :  { %v33_v7 = vsel %vm31_vm0, %v166_v4, 256  ;;  %v34_v8 = vsel %vm32_vm1, %v25_v5, 256 }
  0x9c   :  { %vm35_vm2 = vcmp.lt.s32.totalorder %v33_v7, %v34_v8 }
  0x9d   :  { %v36_v9 = vsel %vm35_vm2, %v33_v7, %v34_v8 }
  0x9e   :  { %v38_v10 = vshra.s32 %v36_v9, 16  ;;  %v37_v12 = vand.u32 65535, %v36_v9 }
  0xa0   :  { %v40_v11 = vcvt.s32.f32 %v38_v10  ;;  %v39_v14 = vcvt.s32.f32 %v37_v12 }
  0xa2   :  { %41 = vmin.xlane.f32.xlu0 %v40_v11 }
 0x12b   :  { %v42_v13 = vpop.xlane.xlu0 %41 }
 0x12c   :  { %vm43_vm3 = vcmp.eq.f32.partialorder %v40_v11, %v42_v13  ;;  %v48_v16 = vcvt.f32.s32 %v42_v13 }
 0x12d   :  { %v44_v15 = vsel %vm43_vm3, %v39_v14, inf }
 0x12e   :  { %45 = vmin.xlane.f32.xlu1 %v44_v15  ;;  %v49_v18 = vshll.u32 %v48_v16, 16 }
 0x1b7   :  { %v46_v17 = vpop.xlane.xlu1 %45 }
 0x1b8   :  { %v47_v19 = vcvt.f32.s32 %v46_v17 }
 0x1ba   :  { %v50_v20 = vadd.s32 %v49_v18, %v47_v19 }
 0x1bc   :  { %vm51_vm4 = vcmp.eq.s32.totalorder %v166_v4, %v50_v20  ;;  %vm52_vm5 = vcmp.eq.s32.totalorder %v25_v5, %v50_v20 }
 0x1bd   :  { %v53_v21 = vsel %vm51_vm4, -inf, %v21_v0  ;;  %v54_v22 = vsel %vm52_vm5, -inf, %v22_v1 }
 0x1be   :  { %v55_v23 = vmax.f32 %v53_v21, %v54_v22 }
 0x1c0   :  { %56 = vmax.xlane.f32.xlu1 %v55_v23 }
 0x249   :  { %v57_v24 = vpop.xlane.xlu1 %56 }
 0x24a   :  { %vm60_vm6 = vcmp.eq.f32.partialorder %v53_v21, %v57_v24  ;;  %vm61_vm7 = vcmp.eq.f32.partialorder %v54_v22, %v57_v24  ;;  %v59_v43 = vsel %vm58_vm13, %v57_v24, %v30_v42 }
 0x24b   :  { %v62_v25 = vsel %vm60_vm6, %v166_v4, 256  ;;  %v63_v26 = vsel %vm61_vm7, %v25_v5, 256 }
 0x24c   :  { %vm64_vm8 = vcmp.lt.s32.totalorder %v62_v25, %v63_v26 }
 0x24d   :  { %v65_v27 = vsel %vm64_vm8, %v62_v25, %v63_v26 }
 0x24e   :  { %v67_v28 = vshra.s32 %v65_v27, 16  ;;  %v66_v30 = vand.u32 65535, %v65_v27 }
 0x250   :  { %v69_v29 = vcvt.s32.f32 %v67_v28  ;;  %v68_v32 = vcvt.s32.f32 %v66_v30 }
 0x252   :  { %70 = vmin.xlane.f32.xlu0 %v69_v29 }
 0x2db   :  { %v71_v31 = vpop.xlane.xlu0 %70 }
 0x2dc   :  { %vm72_vm9 = vcmp.eq.f32.partialorder %v69_v29, %v71_v31  ;;  %v77_v34 = vcvt.f32.s32 %v71_v31 }
 0x2dd   :  { %v73_v33 = vsel %vm72_vm9, %v68_v32, inf }
 0x2de   :  { %74 = vmin.xlane.f32.xlu1 %v73_v33  ;;  %v78_v36 = vshll.u32 %v77_v34, 16 }
 0x367   :  { %v75_v35 = vpop.xlane.xlu1 %74 }
 0x368   :  { %v76_v37 = vcvt.f32.s32 %v75_v35 }
 0x36a   :  { %v79_v38 = vadd.s32 %v78_v36, %v76_v37 }
 0x36c   :  { %vm80_vm10 = vcmp.eq.s32.totalorder %v166_v4, %v79_v38  ;;  %vm81_vm11 = vcmp.eq.s32.totalorder %v25_v5, %v79_v38 }
 0x36d   :  { %v82_v39 = vsel %vm80_vm10, -inf, %v53_v21  ;;  %v83_v40 = vsel %vm81_vm11, -inf, %v54_v22 }
 0x36e   :  { %v84_v41 = vmax.f32 %v82_v39, %v83_v40 }
 0x370   :  { %85 = vmax.xlane.f32.xlu0 %v84_v41 }
 0x3f9   :  { %v86_v44 = vpop.xlane.xlu0 %85 }
 0x3fa   :  { %v88_v45 = vsel %vm87_vm14, %v86_v44, %v59_v43 }
 0x3fb   :  { %89 = vst [vmem:[#allocation5] sm:$0xff] %v88_v45 }
 0x3fc   :  { %138 = shalt.err (!%p135_p9)
}
 0x3fd   :  { %99 = dma.vmem_to_hbm [thread:$0]  %s97_s11, 128, %s180_s1, [#allocation4]  }
 0x3fe   :  { %149 = dma.done.wait [#allocation4], 128  }
 0x3ff   :  { %150 = vsyncadd [#allocation4], 4294967168 }
 0x400   :  { %103 = vsyncpa [#allocation3], 1 }
 0x401   :  { %104 = vsyncpa [#allocation4], 1 }

</bundles_post_ra>
